<compile_context>
chip_gen: v6e
topology: v6e:2x2x1
jax: 0.10.0
libtpu: 0.0.40
codegen_flags: <defaults>
</compile_context>

<pallas_src>
import functools

import jax
import jax.numpy as jnp
from jax.experimental import pallas as pl
from jax.experimental.pallas import tpu as pltpu


def _round_up(x, m):
    return ((x + m - 1) // m) * m


def _soft_q_kernel(s_ref, a_ref, w1s_ref, w1a_ref, b1_ref, w2_ref, b2_ref,
                   w3_ref, b3_ref, out_ref):
    cdt = w2_ref.dtype  # MXU-input dtype (bf16 default, f32 fidelity path)

    # fc1 as a split-K matmul over the [state; action] concat: (H, TB).
    h = jnp.dot(w1s_ref[...], s_ref[...].astype(cdt),
                preferred_element_type=jnp.float32)
    h = h + jnp.dot(w1a_ref[...], a_ref[...].astype(cdt),
                    preferred_element_type=jnp.float32)
    h = jnp.maximum(h + b1_ref[...], 0.0)          # + (H,1) bias column

    # fc2: (H, H) @ (H, TB), f32 accumulation.
    h = jnp.dot(w2_ref[...], h.astype(cdt), preferred_element_type=jnp.float32)
    h = jnp.maximum(h + b2_ref[...], 0.0)

    # fc3: (1, H) @ (H, TB) -> lane-dense (1, TB) row of q-values.
    q = jnp.dot(w3_ref[...], h.astype(cdt), preferred_element_type=jnp.float32)
    out_ref[...] = (q + b3_ref[0]).astype(out_ref.dtype)


def prepare_params(params, state_dim, compute_dtype=jnp.bfloat16):
    """One-time prep per parameter update (keeps it out of the hot forward)."""
    H = params["w2"].shape[0]
    w1 = jnp.asarray(params["w1"])                 # (H, state_dim+action_dim)
    return {
        "w1s": w1[:, :state_dim].astype(compute_dtype),      # (H, state_dim)
        "w1a": w1[:, state_dim:].astype(compute_dtype),      # (H, action_dim)
        "b1": jnp.asarray(params["b1"]).reshape(H, 1).astype(jnp.float32),
        "w2": jnp.asarray(params["w2"]).astype(compute_dtype),   # (H, H)
        "b2": jnp.asarray(params["b2"]).reshape(H, 1).astype(jnp.float32),
        "w3": jnp.asarray(params["w3"]).reshape(1, H).astype(compute_dtype),
        "b3": jnp.asarray(params["b3"]).reshape(1).astype(jnp.float32),
    }


@functools.partial(jax.jit, static_argnames=("batch_tile",))
def soft_q_forward(state, action, prep, *, batch_tile=2048):
    """state: (B, state_dim), action: (B, action_dim) -> q: (B, 1) float32."""
    B, state_dim = state.shape
    action_dim = action.shape[1]
    H = prep["w2"].shape[0]
    in_dim = state_dim + action_dim

    # Batch-on-lanes layout: the kernel consumes x^T.  One small XLA transpose
    # here buys dense loads and a dense (1, TB) output store; for typical SAC
    # minibatches its cost is negligible (store the replay batch transposed
    # upstream if B is huge and this pass matters).
    s_t = state.astype(jnp.float32).T              # (state_dim, B)
    a_t = action.astype(jnp.float32).T             # (action_dim, B)

    # Tile selection: lane-dim tiles must be multiples of 128 unless a single
    # tile covers the whole (ragged-free) batch.  >=2 steps when possible so
    # both v7x TensorCores get work.
    cap = max(128, (batch_tile // 128) * 128)
    if B <= 128:
        tb = B                                     # one tile, block == array
    else:
        tb = min(cap, _round_up(pl.cdiv(B, 2), 128))
    n_tiles = pl.cdiv(B, tb)                       # ragged last tile is masked

    batch_map = lambda i: (0, i)                   # input/output tiles advance
    const_map = lambda i: (0, 0)                   # weights stay VMEM-resident

    wbytes = jnp.dtype(prep["w2"].dtype).itemsize
    cost = pl.CostEstimate(
        flops=2 * B * (in_dim * H + H * H + H),
        transcendentals=0,
        bytes_accessed=(B * in_dim * 4 + B * 4
                        + (in_dim * H + H * H + H) * wbytes + (2 * H + 1) * 4),
    )

    q_rows = pl.pallas_call(
        _soft_q_kernel,
        out_shape=jax.ShapeDtypeStruct((1, n_tiles * tb), jnp.float32),
        grid=(n_tiles,),
        in_specs=[
            pl.BlockSpec((state_dim, tb), batch_map),          # state^T tile
            pl.BlockSpec((action_dim, tb), batch_map),         # action^T tile
            pl.BlockSpec((H, state_dim), const_map),           # fc1 W[:, :sd]
            pl.BlockSpec((H, action_dim), const_map),          # fc1 W[:, sd:]
            pl.BlockSpec((H, 1), const_map),                   # b1 column
            pl.BlockSpec((H, H), const_map),                   # fc2 W
            pl.BlockSpec((H, 1), const_map),                   # b2 column
            pl.BlockSpec((1, H), const_map),                   # fc3 W row
            pl.BlockSpec(memory_space=pltpu.MemorySpace.SMEM), # b3 (1,) scalar
        ],
        out_specs=pl.BlockSpec((1, tb), batch_map),
        compiler_params=pltpu.CompilerParams(
            dimension_semantics=("parallel",)),                # v7x 2 TCs
        cost_estimate=cost,
    )(s_t, a_t, prep["w1s"], prep["w1a"], prep["b1"], prep["w2"], prep["b2"],
      prep["w3"], prep["b3"])

    return q_rows[0, :B][:, None]                              # (B, 1)


def init_params(key, state_dim, action_dim, hidden_dim=256):
    """Deterministic synthetic init, same layout as the PyTorch nn.Linear's."""
    d_in = state_dim + action_dim
    ks = jax.random.split(key, 6)

    def uniform(k, shape, fan_in):
        bound = 1.0 / jnp.sqrt(jnp.float32(fan_in))
        return jax.random.uniform(k, shape, jnp.float32, -bound, bound)

    return {
        "w1": uniform(ks[0], (hidden_dim, d_in), d_in),        # (out, in)
        "b1": uniform(ks[1], (hidden_dim,), d_in),
        "w2": uniform(ks[2], (hidden_dim, hidden_dim), hidden_dim),
        "b2": uniform(ks[3], (hidden_dim,), hidden_dim),
        "w3": uniform(ks[4], (1, hidden_dim), hidden_dim),
        "b3": uniform(ks[5], (1,), hidden_dim),
    }


def reference_forward(state, action, params):
    """Pure-JAX f32 reference with exact PyTorch forward semantics."""
    x = jnp.concatenate([state, action], axis=-1).astype(jnp.float32)
    h = jnp.maximum(x @ params["w1"].T + params["b1"], 0.0)
    h = jnp.maximum(h @ params["w2"].T + params["b2"], 0.0)
    return h @ params["w3"].T + params["b3"]


if __name__ == "__main__":
    key = jax.random.PRNGKey(0)
    k_params, k_state, k_action = jax.random.split(key, 3)

    batch, state_dim, action_dim = 4, 8, 4
    params = init_params(k_params, state_dim, action_dim, hidden_dim=256)
    prep_bf16 = prepare_params(params, state_dim, compute_dtype=jnp.bfloat16)

    # Small-batch check (single tile, block == full array dims).
    state = jax.random.normal(k_state, (batch, state_dim), jnp.float32)
    action = jax.random.normal(k_action, (batch, action_dim), jnp.float32)
    q = soft_q_forward(state, action, prep_bf16)
    jax.block_until_ready(q)
    q_ref = reference_forward(state, action, params)
    assert q.shape == (batch, 1), q.shape
    assert jnp.allclose(q, q_ref, atol=2e-2, rtol=2e-2), (q, q_ref)

    # Larger, non-tile-multiple batch: >=2 grid steps (v7x megacore split) and
    # a ragged last tile handled by masking, no host-side padding copy.
    big_b = 1000
    k_s2, k_a2 = jax.random.split(jax.random.PRNGKey(1))
    state2 = jax.random.normal(k_s2, (big_b, state_dim), jnp.float32)
    action2 = jax.random.normal(k_a2, (big_b, action_dim), jnp.float32)
    q2 = soft_q_forward(state2, action2, prep_bf16)
    jax.block_until_ready(q2)
    q2_ref = reference_forward(state2, action2, params)
    assert q2.shape == (big_b, 1), q2.shape
    assert jnp.allclose(q2, q2_ref, atol=2e-2, rtol=2e-2)

    # f32 compute path: PyTorch-fidelity numerics (for critic-target use).
    prep_f32 = prepare_params(params, state_dim, compute_dtype=jnp.float32)
    q3 = soft_q_forward(state2, action2, prep_f32)
    jax.block_until_ready(q3)
    assert jnp.allclose(q3, q2_ref, atol=1e-3, rtol=1e-3)

    print("KERNEL_OK")
</pallas_src>

<mosaic_0001>
module attributes {stable_mosaic.version = 11 : i64} {
  func.func @_soft_q_kernel(%arg0: i32, %arg1: memref<8x4xf32, #tpu.memory_space<vmem>>, %arg2: memref<4x4xf32, #tpu.memory_space<vmem>>, %arg3: memref<256x8xbf16, #tpu.memory_space<vmem>>, %arg4: memref<256x4xbf16, #tpu.memory_space<vmem>>, %arg5: memref<256x1xf32, #tpu.memory_space<vmem>>, %arg6: memref<256x256xbf16, #tpu.memory_space<vmem>>, %arg7: memref<256x1xf32, #tpu.memory_space<vmem>>, %arg8: memref<1x256xbf16, #tpu.memory_space<vmem>>, %arg9: memref<1xf32, #tpu.memory_space<smem>>, %arg10: memref<1x4xf32, #tpu.memory_space<vmem>>) attributes {dimension_semantics = [#tpu.dimension_semantics<parallel>], iteration_bounds = array<i64: 1>, scalar_prefetch = 0 : i64, scratch_operands = 0 : i64, tpu.core_type = #tpu.core_type<tc>, window_params = [{transform_indices = @transform_0, window_bounds = array<i64: 8, 4>}, {transform_indices = @transform_1, window_bounds = array<i64: 4, 4>}, {pipeline_mode = #tpu.pipeline_mode<synchronous>, transform_indices = @transform_2, window_bounds = array<i64: 256, 8>}, {pipeline_mode = #tpu.pipeline_mode<synchronous>, transform_indices = @transform_3, window_bounds = array<i64: 256, 4>}, {pipeline_mode = #tpu.pipeline_mode<synchronous>, transform_indices = @transform_4, window_bounds = array<i64: 256, 1>}, {pipeline_mode = #tpu.pipeline_mode<synchronous>, transform_indices = @transform_5, window_bounds = array<i64: 256, 256>}, {pipeline_mode = #tpu.pipeline_mode<synchronous>, transform_indices = @transform_6, window_bounds = array<i64: 256, 1>}, {pipeline_mode = #tpu.pipeline_mode<synchronous>, transform_indices = @transform_7, window_bounds = array<i64: 1, 256>}, {transform_indices = @transform_8, window_bounds = array<i64: 1>}, {transform_indices = @transform_9, window_bounds = array<i64: 1, 4>}]} {
    %c0 = arith.constant 0 : index
    %c0_0 = arith.constant 0 : index
    %0 = vector.load %arg3[%c0, %c0_0] : memref<256x8xbf16, #tpu.memory_space<vmem>>, vector<256x8xbf16>
    %c0_1 = arith.constant 0 : index
    %c0_2 = arith.constant 0 : index
    %1 = vector.load %arg1[%c0_1, %c0_2] : memref<8x4xf32, #tpu.memory_space<vmem>>, vector<8x4xf32>
    %2 = arith.truncf %1 : vector<8x4xf32> to vector<8x4xbf16>
    %cst = arith.constant dense<0.000000e+00> : vector<256x4xf32>
    %3 = tpu.matmul %0, %2, %cst {dimension_numbers = #tpu.dot_dimension_numbers<[1], [0], [0], [1], [0, 0, 1, 1], [], []>} : vector<256x8xbf16>, vector<8x4xbf16>, vector<256x4xf32> -> vector<256x4xf32>
    %c0_3 = arith.constant 0 : index
    %c0_4 = arith.constant 0 : index
    %4 = vector.load %arg4[%c0_3, %c0_4] : memref<256x4xbf16, #tpu.memory_space<vmem>>, vector<256x4xbf16>
    %c0_5 = arith.constant 0 : index
    %c0_6 = arith.constant 0 : index
    %5 = vector.load %arg2[%c0_5, %c0_6] : memref<4x4xf32, #tpu.memory_space<vmem>>, vector<4x4xf32>
    %6 = arith.truncf %5 : vector<4x4xf32> to vector<4x4xbf16>
    %cst_7 = arith.constant dense<0.000000e+00> : vector<256x4xf32>
    %7 = tpu.matmul %4, %6, %cst_7 {dimension_numbers = #tpu.dot_dimension_numbers<[1], [0], [0], [1], [0, 0, 1, 1], [], []>} : vector<256x4xbf16>, vector<4x4xbf16>, vector<256x4xf32> -> vector<256x4xf32>
    %8 = arith.addf %3, %7 : vector<256x4xf32>
    %c0_8 = arith.constant 0 : index
    %c0_9 = arith.constant 0 : index
    %9 = vector.load %arg5[%c0_8, %c0_9] : memref<256x1xf32, #tpu.memory_space<vmem>>, vector<256x1xf32>
    %10 = vector.broadcast %9 : vector<256x1xf32> to vector<256x4xf32>
    %11 = arith.addf %8, %10 : vector<256x4xf32>
    %cst_10 = arith.constant 0.000000e+00 : f32
    %12 = vector.broadcast %cst_10 : f32 to vector<256x4xf32>
    %13 = arith.maximumf %11, %12 : vector<256x4xf32>
    %c0_11 = arith.constant 0 : index
    %c0_12 = arith.constant 0 : index
    %14 = vector.load %arg6[%c0_11, %c0_12] : memref<256x256xbf16, #tpu.memory_space<vmem>>, vector<256x256xbf16>
    %15 = arith.truncf %13 : vector<256x4xf32> to vector<256x4xbf16>
    %cst_13 = arith.constant dense<0.000000e+00> : vector<256x4xf32>
    %16 = tpu.matmul %14, %15, %cst_13 {dimension_numbers = #tpu.dot_dimension_numbers<[1], [0], [0], [1], [0, 0, 1, 1], [], []>} : vector<256x256xbf16>, vector<256x4xbf16>, vector<256x4xf32> -> vector<256x4xf32>
    %c0_14 = arith.constant 0 : index
    %c0_15 = arith.constant 0 : index
    %17 = vector.load %arg7[%c0_14, %c0_15] : memref<256x1xf32, #tpu.memory_space<vmem>>, vector<256x1xf32>
    %18 = vector.broadcast %17 : vector<256x1xf32> to vector<256x4xf32>
    %19 = arith.addf %16, %18 : vector<256x4xf32>
    %cst_16 = arith.constant 0.000000e+00 : f32
    %20 = vector.broadcast %cst_16 : f32 to vector<256x4xf32>
    %21 = arith.maximumf %19, %20 : vector<256x4xf32>
    %c0_17 = arith.constant 0 : index
    %c0_18 = arith.constant 0 : index
    %22 = vector.load %arg8[%c0_17, %c0_18] : memref<1x256xbf16, #tpu.memory_space<vmem>>, vector<1x256xbf16>
    %23 = arith.truncf %21 : vector<256x4xf32> to vector<256x4xbf16>
    %cst_19 = arith.constant dense<0.000000e+00> : vector<1x4xf32>
    %24 = tpu.matmul %22, %23, %cst_19 {dimension_numbers = #tpu.dot_dimension_numbers<[1], [0], [0], [1], [0, 0, 1, 1], [], []>} : vector<1x256xbf16>, vector<256x4xbf16>, vector<1x4xf32> -> vector<1x4xf32>
    %c0_20 = arith.constant 0 : index
    %25 = memref.load %arg9[%c0_20] : memref<1xf32, #tpu.memory_space<smem>>
    %26 = vector.broadcast %25 : f32 to vector<1x4xf32>
    %27 = arith.addf %24, %26 : vector<1x4xf32>
    %c0_21 = arith.constant 0 : index
    %c0_22 = arith.constant 0 : index
    %28 = vector.load %arg10[%c0_21, %c0_22] : memref<1x4xf32, #tpu.memory_space<vmem>>, vector<1x4xf32>
    tpu.vector_store %arg10[%c0_21, %c0_22], %27 {strides = array<i32>} : memref<1x4xf32, #tpu.memory_space<vmem>>, vector<1x4xf32>,
    return
  }
  func.func @transform_0(%arg0: i32) -> (i32, i32) {
    %c0_i32 = arith.constant 0 : i32
    %c0_i32_0 = arith.constant 0 : i32
    return %c0_i32, %arg0 : i32, i32
  }
  func.func @transform_1(%arg0: i32) -> (i32, i32) {
    %c0_i32 = arith.constant 0 : i32
    %c0_i32_0 = arith.constant 0 : i32
    return %c0_i32, %arg0 : i32, i32
  }
  func.func @transform_2(%arg0: i32) -> (i32, i32) {
    %c0_i32 = arith.constant 0 : i32
    %c0_i32_0 = arith.constant 0 : i32
    %c0_i32_1 = arith.constant 0 : i32
    return %c0_i32, %c0_i32_0 : i32, i32
  }
  func.func @transform_3(%arg0: i32) -> (i32, i32) {
    %c0_i32 = arith.constant 0 : i32
    %c0_i32_0 = arith.constant 0 : i32
    %c0_i32_1 = arith.constant 0 : i32
    return %c0_i32, %c0_i32_0 : i32, i32
  }
  func.func @transform_4(%arg0: i32) -> (i32, i32) {
    %c0_i32 = arith.constant 0 : i32
    %c0_i32_0 = arith.constant 0 : i32
    %c0_i32_1 = arith.constant 0 : i32
    return %c0_i32, %c0_i32_0 : i32, i32
  }
  func.func @transform_5(%arg0: i32) -> (i32, i32) {
    %c0_i32 = arith.constant 0 : i32
    %c0_i32_0 = arith.constant 0 : i32
    %c0_i32_1 = arith.constant 0 : i32
    return %c0_i32, %c0_i32_0 : i32, i32
  }
  func.func @transform_6(%arg0: i32) -> (i32, i32) {
    %c0_i32 = arith.constant 0 : i32
    %c0_i32_0 = arith.constant 0 : i32
    %c0_i32_1 = arith.constant 0 : i32
    return %c0_i32, %c0_i32_0 : i32, i32
  }
  func.func @transform_7(%arg0: i32) -> (i32, i32) {
    %c0_i32 = arith.constant 0 : i32
    %c0_i32_0 = arith.constant 0 : i32
    %c0_i32_1 = arith.constant 0 : i32
    return %c0_i32, %c0_i32_0 : i32, i32
  }
  func.func @transform_8(%arg0: i32) -> i32 {
    %c0_i32 = arith.constant 0 : i32
    %c0_i32_0 = arith.constant 0 : i32
    return %c0_i32 : i32
  }
  func.func @transform_9(%arg0: i32) -> (i32, i32) {
    %c0_i32 = arith.constant 0 : i32
    %c0_i32_0 = arith.constant 0 : i32
    return %c0_i32, %arg0 : i32, i32
  }
}

</mosaic_0001>

<bundles_post_ra>
// kernel: soft_q_forward.1
= control target key start
LH: loop header
LB: loop body
LE: loop exit
PB: predicated region body
PF: predicated region fallthrough
CT: control target
= control target key end

     0   :  { %vm232_vm0 = vcmask 1041408   ;;  %v2098_v3 = vmov 0   ;;  %vm526_vm1 = vcmask 1043456   ;;  %vm183_vm2 = vcmask 31744   ;;  %s2873_s0 = inlined_call_operand.vmem [shape: f32[8,4], index: 0, kind: input, shape index: {}]   ;;  %s2874_s1 = inlined_call_operand.vmem [shape: f32[4,4], index: 1, kind: input, shape index: {}]   ;;  %s2875_s2 = inlined_call_operand.vmem [shape: bf16[256,8], index: 2, kind: input, shape index: {}]   ;;  %s2876_s3 = inlined_call_operand.vmem [shape: bf16[256,4], index: 3, kind: input, shape index: {}]   ;;  %s2877_s4 = inlined_call_operand.vmem [shape: f32[256,1], index: 4, kind: input, shape index: {}]   ;;  %s2878_s5 = inlined_call_operand.vmem [shape: bf16[256,256], index: 5, kind: input, shape index: {}]   ;;  %s2879_s6 = inlined_call_operand.vmem [shape: f32[256,1], index: 6, kind: input, shape index: {}]   ;;  %s2880_s7 = inlined_call_operand.vmem [shape: bf16[1,256], index: 7, kind: input, shape index: {}]   ;;  %s2881_s8 = inlined_call_operand.<no memory space> [shape: f32[1], index: 8, kind: input, shape index: {}]   ;;  %s2882_s9 = inlined_call_operand.hbm [shape: f32[1,4], index: 9, kind: output, shape index: {}]  }
   0x1   :  { %v721_v0 = vld [vmem:[%s2877_s4 + $0xf0] sm:$0xff]  ;;  %v101_v2 = vld [vmem:[%s2874_s1] sm:$0xf]  ;;  %1995 = vset.pattern.permute.xlu1 %v2098_v3  ;;  %1994 = vset.pattern.permute.xlu0 %v2098_v3  ;;  %v722_v6 = vld [vmem:[%s2877_s4 + $0xf8] sm:$0xff]  ;;  %vm477_vm3 = vcmask 64512  }
   0x2   :  { %v705_v1 = vld [vmem:[%s2877_s4 + $0x70] sm:$0xff]  ;;  %v102_v4 = vpack.c.bf16 %v101_v2, %v101_v2  ;;  %v67_v5 = vld [vmem:[%s2873_s0] sm:$0xff]  ;;  %v706_v7 = vld [vmem:[%s2877_s4 + $0x78] sm:$0xff]  ;;  %875 = vperm.xlu0 %1994, %v721_v0  }
   0x3   :  { %795 = vperm.xlu1 %1995, %v705_v1   ;;  %v68_v8 = vpack.c.bf16 %v67_v5, %v67_v5  ;;  %v1996_v9 = vld [vmem:[%s2876_s3] sm:$0xff]   ;;  %v1998_v13 = vld [vmem:[%s2876_s3 + $0x8] sm:$0xff]   ;;  %v2000_v17 = vld [vmem:[%s2876_s3 + $0x10] sm:$0xff]  }
   0x4   :  { %1989 = vmatprep.subr.msk.bf16.mxu0 %vm232_vm0, %v102_v4  ;;  %v234_v10 = vsel %vm232_vm0, %v102_v4, 0  ;;  %v1997_v11 = vld [vmem:[%s2875_s2] sm:$0xff]   ;;  %1907 = vmatprep.mubr.msk.bf16.mxu0 %vm183_vm2, %v1996_v9  ;;  %v1999_v14 = vld [vmem:[%s2875_s2 + $0x8] sm:$0xff]   ;;  %v2001_v18 = vld [vmem:[%s2875_s2 + $0x10] sm:$0xff]  }
   0x5   :  { %1990 = vmatprep.subr.msk.bf16.mxu1 %vm526_vm1, %v68_v8  ;;  %1906 = vmatpush3.bf16.msra.mxu0 %v234_v10  ;;  %v528_v12 = vsel %vm526_vm1, %v68_v8, 0  ;;  %v719_v15 = vld [vmem:[%s2877_s4 + $0xe0] sm:$0xff]  ;;  %v720_v16 = vld [vmem:[%s2877_s4 + $0xe8] sm:$0xff]  ;;  %v2002_v21 = vld [vmem:[%s2876_s3 + $0x18] sm:$0xff]  }
   0x6   :  { %1940 = vmatpush3.bf16.msra.mxu1 %v528_v12  ;;  %880 = vperm.xlu0 %1994, %v722_v6   ;;  %v704_v19 = vld [vmem:[%s2877_s4 + $0x68] sm:$0xff]  ;;  %v703_v20 = vld [vmem:[%s2877_s4 + $0x60] sm:$0xff]  ;;  %v2003_v22 = vld [vmem:[%s2875_s2 + $0x18] sm:$0xff]  }
   0x7   :  { %800 = vperm.xlu1 %1995, %v706_v7   ;;  %1941 = vmatprep.mubr.msk.bf16.mxu1 %vm477_vm3, %v1997_v11  ;;  %v718_v23 = vld [vmem:[%s2877_s4 + $0xd8] sm:$0xff]  ;;  %v2004_v24 = vld [vmem:[%s2876_s3 + $0x20] sm:$0xff]   ;;  %v717_v26 = vld [vmem:[%s2877_s4 + $0xd0] sm:$0xff] }
   0x8   :  { %1908 = vmatmul.mubr.msk.bf16.vlgmr.msra.gmra.mxu0 %vm183_vm2, %v1998_v13  ;;  %v2005_v25 = vld [vmem:[%s2875_s2 + $0x20] sm:$0xff]   ;;  %v702_v27 = vld [vmem:[%s2877_s4 + $0x58] sm:$0xff]  ;;  %v701_v28 = vld [vmem:[%s2877_s4 + $0x50] sm:$0xff] }
   0x9   :  { %1942 = vmatmul.mubr.msk.bf16.vlgmr.msra.gmra.mxu1 %vm477_vm3, %v1999_v14  ;;  %1911 = vmatprep.mubr.msk.bf16.mxu0 %vm183_vm2, %v2000_v17  ;;  %v2006_v29 = vld [vmem:[%s2876_s3 + $0x28] sm:$0xff]   ;;  %v2008_v31 = vld [vmem:[%s2876_s3 + $0x30] sm:$0xff]   ;;  %v715_v34 = vld [vmem:[%s2877_s4 + $0xc0] sm:$0xff] }
   0xa   :  { %865 = vperm.xlu0 %1994, %v719_v15   ;;  %1945 = vmatprep.mubr.msk.bf16.mxu1 %vm477_vm3, %v2001_v18  ;;  %v2007_v30 = vld [vmem:[%s2875_s2 + $0x28] sm:$0xff]   ;;  %v2009_v32 = vld [vmem:[%s2875_s2 + $0x30] sm:$0xff]   ;;  %v699_v36 = vld [vmem:[%s2877_s4 + $0x40] sm:$0xff] }
   0xb   :  { %870 = vperm.xlu1 %1995, %v720_v16   ;;  %v716_v33 = vld [vmem:[%s2877_s4 + $0xc8] sm:$0xff]  ;;  %v2010_v37 = vld [vmem:[%s2876_s3 + $0x38] sm:$0xff]   ;;  %v2012_v39 = vld [vmem:[%s2876_s3 + $0x40] sm:$0xff]  }
   0xc   :  { %v700_v35 = vld [vmem:[%s2877_s4 + $0x48] sm:$0xff]  ;;  %v2011_v38 = vld [vmem:[%s2875_s2 + $0x38] sm:$0xff]   ;;  %v2013_v40 = vld [vmem:[%s2875_s2 + $0x40] sm:$0xff]  }
   0xd   :  { %v714_v41 = vld [vmem:[%s2877_s4 + $0xb8] sm:$0xff]  ;;  %v713_v42 = vld [vmem:[%s2877_s4 + $0xb0] sm:$0xff]  ;;  %v2014_v45 = vld [vmem:[%s2876_s3 + $0x48] sm:$0xff]  }
   0xe   :  { %785 = vperm.xlu0 %1994, %v703_v20   ;;  %v698_v43 = vld [vmem:[%s2877_s4 + $0x38] sm:$0xff]  ;;  %v697_v44 = vld [vmem:[%s2877_s4 + $0x30] sm:$0xff]  ;;  %v2015_v46 = vld [vmem:[%s2875_s2 + $0x48] sm:$0xff]  }
   0xf   :  { %790 = vperm.xlu1 %1995, %v704_v19   ;;  %v2016_v47 = vld [vmem:[%s2876_s3 + $0x50] sm:$0xff]   ;;  %v712_v49 = vld [vmem:[%s2877_s4 + $0xa8] sm:$0xff]  ;;  %v711_v50 = vld [vmem:[%s2877_s4 + $0xa0] sm:$0xff] }
  0x10   :  { %1912 = vmatmul.mubr.msk.bf16.gmra.mxu0 %vm183_vm2, %v2002_v21  ;;  %v2017_v48 = vld [vmem:[%s2875_s2 + $0x50] sm:$0xff]   ;;  %v696_v51 = vld [vmem:[%s2877_s4 + $0x28] sm:$0xff]  ;;  %v695_v52 = vld [vmem:[%s2877_s4 + $0x20] sm:$0xff] }
  0x11   :  { %1946 = vmatmul.mubr.msk.bf16.gmra.mxu1 %vm477_vm3, %v2003_v22  ;;  %1915 = vmatprep.mubr.msk.bf16.mxu0 %vm183_vm2, %v2004_v24  ;;  %v2018_v53 = vld [vmem:[%s2876_s3 + $0x58] sm:$0xff]   ;;  %v2020_v55 = vld [vmem:[%s2876_s3 + $0x60] sm:$0xff]   ;;  %v709_v58 = vld [vmem:[%s2877_s4 + $0x90] sm:$0xff] }
  0x12   :  { %1949 = vmatprep.mubr.msk.bf16.mxu1 %vm477_vm3, %v2005_v25  ;;  %855 = vperm.xlu0 %1994, %v717_v26   ;;  %v2019_v54 = vld [vmem:[%s2875_s2 + $0x58] sm:$0xff]   ;;  %v2021_v56 = vld [vmem:[%s2875_s2 + $0x60] sm:$0xff]   ;;  %v693_v60 = vld [vmem:[%s2877_s4 + $0x10] sm:$0xff] }
  0x13   :  { %860 = vperm.xlu1 %1995, %v718_v23   ;;  %v710_v57 = vld [vmem:[%s2877_s4 + $0x98] sm:$0xff]  ;;  %v2022_v61 = vld [vmem:[%s2876_s3 + $0x68] sm:$0xff]   ;;  %v2024_v63 = vld [vmem:[%s2876_s3 + $0x70] sm:$0xff]  }
  0x14   :  { %v694_v59 = vld [vmem:[%s2877_s4 + $0x18] sm:$0xff]  ;;  %v2023_v62 = vld [vmem:[%s2875_s2 + $0x68] sm:$0xff]   ;;  %v707_v1 = vld [vmem:[%s2877_s4 + $0x80] sm:$0xff] }
  0x15   :  { %v708_v0 = vld [vmem:[%s2877_s4 + $0x88] sm:$0xff]  ;;  %v2025_v2 = vld [vmem:[%s2875_s2 + $0x70] sm:$0xff]   ;;  %v691_v4 = vld [vmem:[%s2877_s4] sm:$0xff] }
  0x16   :  { %775 = vperm.xlu0 %1994, %v701_v28   ;;  %v692_v3 = vld [vmem:[%s2877_s4 + $0x8] sm:$0xff]  ;;  %v2026_v5 = vld [vmem:[%s2876_s3 + $0x78] sm:$0xff]   ;;  %v1025_v8 = vld [vmem:[%s2879_s6 + $0xf0] sm:$0xff] }
  0x17   :  { %780 = vperm.xlu1 %1995, %v702_v27   ;;  %v2027_v6 = vld [vmem:[%s2875_s2 + $0x78] sm:$0xff]  }
  0x18   :  { %1916 = vmatmul.mubr.msk.bf16.gmra.mxu0 %vm183_vm2, %v2006_v29  ;;  %v1026_v7 = vld [vmem:[%s2879_s6 + $0xf8] sm:$0xff] }
  0x19   :  { %1950 = vmatmul.mubr.msk.bf16.gmra.mxu1 %vm477_vm3, %v2007_v30  ;;  %1919 = vmatprep.mubr.msk.bf16.mxu0 %vm183_vm2, %v2008_v31 }
  0x1a   :  { %1953 = vmatprep.mubr.msk.bf16.mxu1 %vm477_vm3, %v2009_v32  ;;  %845 = vperm.xlu0 %1994, %v715_v34  }
  0x1b   :  { %850 = vperm.xlu1 %1995, %v716_v33  }
  0x1e   :  { %765 = vperm.xlu0 %1994, %v699_v36  }
  0x1f   :  { %770 = vperm.xlu1 %1995, %v700_v35  }
  0x20   :  { %1920 = vmatmul.mubr.msk.bf16.gmra.mxu0 %vm183_vm2, %v2010_v37 }
  0x21   :  { %1954 = vmatmul.mubr.msk.bf16.gmra.mxu1 %vm477_vm3, %v2011_v38  ;;  %1923 = vmatprep.mubr.msk.bf16.mxu0 %vm183_vm2, %v2012_v39 }
  0x22   :  { %1957 = vmatprep.mubr.msk.bf16.mxu1 %vm477_vm3, %v2013_v40  ;;  %835 = vperm.xlu0 %1994, %v713_v42  }
  0x23   :  { %840 = vperm.xlu1 %1995, %v714_v41  }
  0x26   :  { %755 = vperm.xlu0 %1994, %v697_v44  }
  0x27   :  { %760 = vperm.xlu1 %1995, %v698_v43  }
  0x28   :  { %1924 = vmatmul.mubr.msk.bf16.gmra.mxu0 %vm183_vm2, %v2014_v45 }
  0x29   :  { %1958 = vmatmul.mubr.msk.bf16.gmra.mxu1 %vm477_vm3, %v2015_v46  ;;  %1927 = vmatprep.mubr.msk.bf16.mxu0 %vm183_vm2, %v2016_v47 }
  0x2a   :  { %1961 = vmatprep.mubr.msk.bf16.mxu1 %vm477_vm3, %v2017_v48  ;;  %825 = vperm.xlu0 %1994, %v711_v50  }
  0x2b   :  { %830 = vperm.xlu1 %1995, %v712_v49  }
  0x2e   :  { %745 = vperm.xlu0 %1994, %v695_v52  }
  0x2f   :  { %750 = vperm.xlu1 %1995, %v696_v51  }
  0x30   :  { %1928 = vmatmul.mubr.msk.bf16.gmra.mxu0 %vm183_vm2, %v2018_v53 }
  0x31   :  { %1962 = vmatmul.mubr.msk.bf16.gmra.mxu1 %vm477_vm3, %v2019_v54  ;;  %1931 = vmatprep.mubr.msk.bf16.mxu0 %vm183_vm2, %v2020_v55 }
  0x32   :  { %1965 = vmatprep.mubr.msk.bf16.mxu1 %vm477_vm3, %v2021_v56  ;;  %815 = vperm.xlu0 %1994, %v709_v58  }
  0x33   :  { %820 = vperm.xlu1 %1995, %v710_v57  }
  0x36   :  { %735 = vperm.xlu0 %1994, %v693_v60  }
  0x37   :  { %740 = vperm.xlu1 %1995, %v694_v59  }
  0x38   :  { %1932 = vmatmul.mubr.msk.bf16.gmra.mxu0 %vm183_vm2, %v2022_v61 }
  0x39   :  { %1966 = vmatmul.mubr.msk.bf16.gmra.mxu1 %vm477_vm3, %v2023_v62  ;;  %1935 = vmatprep.mubr.msk.bf16.mxu0 %vm183_vm2, %v2024_v63 }
  0x3a   :  { %1969 = vmatprep.mubr.msk.bf16.mxu1 %vm477_vm3, %v2025_v2  ;;  %805 = vperm.xlu0 %1994, %v707_v1  }
  0x3b   :  { %810 = vperm.xlu1 %1995, %v708_v0  }
  0x3e   :  { %725 = vperm.xlu0 %1994, %v691_v4  }
  0x3f   :  { %730 = vperm.xlu1 %1995, %v692_v3  }
  0x40   :  { %1936 = vmatmul.mubr.msk.bf16.gmra.mxu0 %vm183_vm2, %v2026_v5 }
  0x41   :  { %1970 = vmatmul.mubr.msk.bf16.gmra.mxu1 %vm477_vm3, %v2027_v6 }
  0x42   :  { %15 = vsyncpa [#allocation4], 0  ;;  %1179 = vperm.xlu0 %1994, %v1025_v8   ;;  %v1010_v9 = vld [vmem:[%s2879_s6 + $0x78] sm:$0xff]  ;;  %v1009_v10 = vld [vmem:[%s2879_s6 + $0x70] sm:$0xff]  ;;  %s2100_s0 = smov [#allocation3]   ;;  %vm1624_vm4 = vcmask 24576  }
  0x43   :  { %1184 = vperm.xlu1 %1995, %v1026_v7   ;;  %v1024_v11 = vld [vmem:[%s2879_s6 + $0xe8] sm:$0xff]  ;;  %v1023_v12 = vld [vmem:[%s2879_s6 + $0xe0] sm:$0xff]  ;;  %v1022_v15 = vld [vmem:[%s2879_s6 + $0xd8] sm:$0xff]  ;;  %s1632_s22 = sshll.u32 %s2100_s0, 4  ;;  %s1633_s22 = int_to_ptr.vmem [resolvable:$true] %s1632_s22 }
  0x44   :  { %v1008_v13 = vld [vmem:[%s2879_s6 + $0x68] sm:$0xff]  ;;  %v1007_v14 = vld [vmem:[%s2879_s6 + $0x60] sm:$0xff]  ;;  %v1021_v16 = vld [vmem:[%s2879_s6 + $0xd0] sm:$0xff]  ;;  %s2076_s23 = scalar_lea.vmem %s1633_s22, 16  ;;  %s2080_s24 = scalar_lea.vmem %s1633_s22, 32 }
  0x45   :  { %v1006_v17 = vld [vmem:[%s2879_s6 + $0x58] sm:$0xff]  ;;  %v1005_v18 = vld [vmem:[%s2879_s6 + $0x50] sm:$0xff]  ;;  %v1020_v19 = vld [vmem:[%s2879_s6 + $0xc8] sm:$0xff]  ;;  %p2077_p0 = scmp.ne.s32.totalorder %s1633_s22, %s2076_s23  ;;  %p2081_p1 = scmp.lt.s32.totalorder %s1633_s22, %s1633_s22 }
  0x46   :  { %1099 = vperm.xlu0 %1994, %v1009_v10   ;;  %v1019_v20 = vld [vmem:[%s2879_s6 + $0xc0] sm:$0xff]  ;;  %v1004_v21 = vld [vmem:[%s2879_s6 + $0x48] sm:$0xff]  ;;  %v1018_v23 = vld [vmem:[%s2879_s6 + $0xb8] sm:$0xff]  ;;  %p2082_p2 = scmp.lt.s32.totalorder %s2080_s24, %s2076_s23 }
  0x47   :  { %1104 = vperm.xlu1 %1995, %v1010_v9   ;;  %v1003_v22 = vld [vmem:[%s2879_s6 + $0x40] sm:$0xff]  ;;  %v1017_v24 = vld [vmem:[%s2879_s6 + $0xb0] sm:$0xff]  ;;  %v1002_v25 = vld [vmem:[%s2879_s6 + $0x38] sm:$0xff] }
  0x48   :  { %v1001_v26 = vld [vmem:[%s2879_s6 + $0x30] sm:$0xff]  ;;  %v1016_v27 = vld [vmem:[%s2879_s6 + $0xa8] sm:$0xff]  ;;  %v1015_v28 = vld [vmem:[%s2879_s6 + $0xa0] sm:$0xff]  ;;  %p2083_p3 = por %p2082_p2, %p2081_p1 }
  0x49   :  { %v1000_v29 = vld [vmem:[%s2879_s6 + $0x28] sm:$0xff]  ;;  %v999_v30 = vld [vmem:[%s2879_s6 + $0x20] sm:$0xff]  ;;  %v1014_v31 = vld [vmem:[%s2879_s6 + $0x98] sm:$0xff] }
  0x4a   :  { %1169 = vperm.xlu0 %1994, %v1023_v12   ;;  %v1013_v32 = vld [vmem:[%s2879_s6 + $0x90] sm:$0xff]  ;;  %v998_v33 = vld [vmem:[%s2879_s6 + $0x18] sm:$0xff]  ;;  %v1012_v35 = vld [vmem:[%s2879_s6 + $0x88] sm:$0xff]  ;;  %p2084_p4 = pnand %p2083_p3, %p2077_p0 }
  0x4b   :  { %1174 = vperm.xlu1 %1995, %v1024_v11   ;;  %v997_v34 = vld [vmem:[%s2879_s6 + $0x10] sm:$0xff]  ;;  %v1011_v36 = vld [vmem:[%s2879_s6 + $0x80] sm:$0xff]  ;;  %v996_v37 = vld [vmem:[%s2879_s6 + $0x8] sm:$0xff] }
  0x4c   :  { %v995_v38 = vld [vmem:[%s2879_s6] sm:$0xff]  ;;  %v2033_v60 = vld [vmem:[%s2878_s5 + $0x94] ss:$8 sps:$4 sm:$0xff]  }
  0x4d   :  { %v2030_v58 = vld [vmem:[%s2878_s5 + $0x4] ss:$8 sps:$4 sm:$0xff]   ;;  %1451 = vmatprep.mubr.bf16.mxu1 %v2033_v60 }
  0x4e   :  { %1089 = vperm.xlu0 %1994, %v1007_v14   ;;  %1379 = vmatprep.mubr.bf16.mxu0 %v2030_v58 }
  0x4f   :  { %1094 = vperm.xlu1 %1995, %v1008_v13  }
  0x52   :  { %1159 = vperm.xlu0 %1994, %v1021_v16  }
  0x53   :  { %1164 = vperm.xlu1 %1995, %v1022_v15  }
  0x56   :  { %1079 = vperm.xlu0 %1994, %v1005_v18  }
  0x57   :  { %1084 = vperm.xlu1 %1995, %v1006_v17  }
  0x5a   :  { %1149 = vperm.xlu0 %1994, %v1019_v20  }
  0x5b   :  { %1154 = vperm.xlu1 %1995, %v1020_v19  }
  0x5e   :  { %1069 = vperm.xlu0 %1994, %v1003_v22  }
  0x5f   :  { %1074 = vperm.xlu1 %1995, %v1004_v21  }
  0x62   :  { %1139 = vperm.xlu0 %1994, %v1017_v24  }
  0x63   :  { %1144 = vperm.xlu1 %1995, %v1018_v23  }
  0x66   :  { %1059 = vperm.xlu0 %1994, %v1001_v26  }
  0x67   :  { %1064 = vperm.xlu1 %1995, %v1002_v25  }
  0x6a   :  { %1129 = vperm.xlu0 %1994, %v1015_v28  }
  0x6b   :  { %1134 = vperm.xlu1 %1995, %v1016_v27  }
  0x6e   :  { %1049 = vperm.xlu0 %1994, %v999_v30  }
  0x6f   :  { %1054 = vperm.xlu1 %1995, %v1000_v29  }
  0x72   :  { %1119 = vperm.xlu0 %1994, %v1013_v32  }
  0x73   :  { %1124 = vperm.xlu1 %1995, %v1014_v31  }
  0x76   :  { %1039 = vperm.xlu0 %1994, %v997_v34  }
  0x77   :  { %1044 = vperm.xlu1 %1995, %v998_v33  }
  0x7a   :  { %1109 = vperm.xlu0 %1994, %v1011_v36  }
  0x7b   :  { %1114 = vperm.xlu1 %1995, %v1012_v35  }
  0x7d   :  { %v2479_v39 = vpop.permute.xlu0 %875 }
  0x7e   :  { %v2481_v40 = vpop.permute.xlu1 %795  ;;  %1029 = vperm.xlu0 %1994, %v995_v38  }
  0x7f   :  { %1034 = vperm.xlu1 %1995, %v996_v37  }
  0x81   :  { %v2483_v41 = vpop.permute.xlu0 %880 }
  0x82   :  { %v2485_v42 = vpop.permute.xlu1 %800 }
  0x85   :  { %v2487_v43 = vpop.permute.xlu0 %865 }
  0x86   :  { %v2489_v44 = vpop.permute.xlu1 %870 }
  0x89   :  { %v2493_v46 = vpop.permute.xlu0 %785 }
  0x8a   :  { %v2491_v45 = vpop.permute.xlu1 %790 }
  0x8d   :  { %v2497_v48 = vpop.permute.xlu0 %855 }
  0x8e   :  { %v2495_v47 = vpop.permute.xlu1 %860 }
  0x91   :  { %v2499_v49 = vpop.permute.xlu0 %775 }
  0x92   :  { %v2501_v50 = vpop.permute.xlu1 %780 }
  0x95   :  { %v2503_v51 = vpop.permute.xlu0 %845 }
  0x96   :  { %v2505_v52 = vpop.permute.xlu1 %850 }
  0x99   :  { %v2507_v53 = vpop.permute.xlu0 %765 }
  0x9a   :  { %2889 = vst [vmem:[#allocation6_spill] sm:$0xff] %v2507_v53  ;;  %v2509_v54 = vpop.permute.xlu1 %770 }
  0x9d   :  { %v2511_v55 = vpop.permute.xlu0 %835 }
  0x9e   :  { %2890 = vst [vmem:[#allocation7_spill] sm:$0xff] %v2511_v55  ;;  %v2513_v56 = vpop.permute.xlu1 %840 }
  0xa1   :  { %v756_v57 = vpop.permute.xlu0 %755 }
  0xa2   :  { %v761_v59 = vpop.permute.xlu1 %760 }
  0xa5   :  { %v2521_v61 = vpop.permute.xlu0 %825 }
  0xa6   :  { %2891 = vst [vmem:[#allocation8_spill] sm:$0xff] %v2521_v61  ;;  %v2523_v62 = vpop.permute.xlu1 %830 }
  0xa7   :  { %2892 = vst [vmem:[#allocation9_spill] sm:$0xff] %v2523_v62 }
  0xa9   :  { %v746_v63 = vpop.permute.xlu0 %745 }
  0xaa   :  { %v751_v0 = vpop.permute.xlu1 %750 }
  0xad   :  { %v2525_v1 = vpop.permute.xlu0 %815 }
  0xae   :  { %2893 = vst [vmem:[#allocation10_spill] sm:$0xff] %v2525_v1  ;;  %v2527_v2 = vpop.permute.xlu1 %820 }
  0xaf   :  { %2894 = vst [vmem:[#allocation11_spill] sm:$0xff] %v2527_v2 }
  0xb1   :  { %v736_v3 = vpop.permute.xlu0 %735 }
  0xb2   :  { %v741_v4 = vpop.permute.xlu1 %740 }
  0xb5   :  { %v2529_v5 = vpop.permute.xlu0 %805 }
  0xb6   :  { %2895 = vst [vmem:[#allocation12_spill] sm:$0xff] %v2529_v5  ;;  %v2531_v8 = vpop.permute.xlu1 %810 }
  0xb7   :  { %2896 = vst [vmem:[#allocation13_spill] sm:$0xff] %v2531_v8 }
  0xb9   :  { %v726_v15 = vpop.permute.xlu0 %725 }
  0xba   :  { %v731_v20 = vpop.permute.xlu1 %730 }
  0xc8   :  { %v1909_v6 = vpop.f32.mrf.mxu0 }
  0xc9   :  { %v1943_v7 = vpop.f32.mrf.mxu1 }
  0xca   :  { %v573_v9 = vadd.f32 %v1943_v7, %v1909_v6  ;;  %v270_v10 = vpop.f32.mrf.mxu0 }
  0xcb   :  { %v564_v11 = vpop.f32.mrf.mxu1 }
  0xcc   :  { %v565_v12 = vadd.f32 %v564_v11, %v270_v10  ;;  %v1910_v13 = vpop.f32.mrf.mxu0  ;;  %v885_v16 = vadd.f32 %v736_v3, %v573_v9 }
  0xcd   :  { %v1944_v14 = vpop.f32.mrf.mxu1 }
  0xce   :  { %v576_v17 = vadd.f32 %v1944_v14, %v1910_v13  ;;  %v273_v18 = vpop.f32.mrf.mxu0  ;;  %v883_v21 = vadd.f32 %v726_v15, %v565_v12  ;;  %v917_v26 = vmax.f32 %v885_v16, 0.0 }
  0xcf   :  { %v567_v19 = vpop.f32.mrf.mxu1 }
  0xd0   :  { %v886_v22 = vadd.f32 %v741_v4, %v576_v17  ;;  %v568_v23 = vadd.f32 %v567_v19, %v273_v18  ;;  %v1913_v24 = vpop.f32.mrf.mxu0  ;;  %v915_v32 = vmax.f32 %v883_v21, 0.0 }
  0xd1   :  { %v1947_v25 = vpop.f32.mrf.mxu1 }
  0xd2   :  { %v918_v27 = vmax.f32 %v886_v22, 0.0  ;;  %v884_v28 = vadd.f32 %v731_v20, %v568_v23  ;;  %v589_v29 = vadd.f32 %v1947_v25, %v1913_v24  ;;  %v286_v30 = vpop.f32.mrf.mxu0 }
  0xd3   :  { %v580_v31 = vpop.f32.mrf.mxu1 }
  0xd4   :  { %v2533_v33 = vpack.c.bf16 %v918_v27, %v917_v26  ;;  %v916_v34 = vmax.f32 %v884_v28, 0.0  ;;  %v581_v35 = vadd.f32 %v580_v31, %v286_v30  ;;  %v1914_v36 = vpop.f32.mrf.mxu0  ;;  %v889_v58 = vadd.f32 %v756_v57, %v589_v29 }
  0xd5   :  { %v1948_v37 = vpop.f32.mrf.mxu1 }
  0xd6   :  { %2897 = vst [vmem:[#allocation14_spill] sm:$0xff] %v2533_v33  ;;  %v2535_v38 = vpack.c.bf16 %v916_v34, %v915_v32  ;;  %v592_v60 = vadd.f32 %v1948_v37, %v1914_v36  ;;  %v289_v3 = vpop.f32.mrf.mxu0  ;;  %v887_v6 = vadd.f32 %v746_v63, %v581_v35  ;;  %v921_v12 = vmax.f32 %v889_v58, 0.0 }
  0xd7   :  { %v583_v4 = vpop.f32.mrf.mxu1 }
  0xd8   :  { %2898 = vst [vmem:[#allocation15_spill] sm:$0xff] %v2535_v38  ;;  %v890_v7 = vadd.f32 %v761_v59, %v592_v60  ;;  %v584_v9 = vadd.f32 %v583_v4, %v289_v3  ;;  %v2537_v10 = vpop.f32.mrf.mxu0  ;;  %v919_v17 = vmax.f32 %v887_v6, 0.0 }
  0xd9   :  { %v2539_v11 = vpop.f32.mrf.mxu1 }
  0xda   :  { %v922_v13 = vmax.f32 %v890_v7, 0.0  ;;  %v888_v14 = vadd.f32 %v751_v0, %v584_v9  ;;  %v2541_v15 = vpop.f32.mrf.mxu0 }
  0xdb   :  { %v2543_v16 = vpop.f32.mrf.mxu1 }
  0xdc   :  { %v2545_v18 = vpack.c.bf16 %v922_v13, %v921_v12  ;;  %v920_v57 = vmax.f32 %v888_v14, 0.0  ;;  %v1918_v19 = vpop.f32.mrf.mxu0 }
  0xdd   :  { %v1952_v20 = vpop.f32.mrf.mxu1 }
  0xde   :  { %2899 = vst [vmem:[#allocation16_spill] sm:$0xff] %v2545_v18  ;;  %v2547_v63 = vpack.c.bf16 %v920_v57, %v919_v17  ;;  %v2549_v59 = vpop.f32.mrf.mxu0 }
  0xdf   :  { %v2551_v21 = vpop.f32.mrf.mxu1 }
  0xe0   :  { %2900 = vst [vmem:[#allocation17_spill] sm:$0xff] %v2547_v63  ;;  %v1921_v22 = vpop.f32.mrf.mxu0 }
  0xe1   :  { %v1955_v23 = vpop.f32.mrf.mxu1 }
  0xe2   :  { %v318_v24 = vpop.f32.mrf.mxu0  ;;  %v621_v1 = vadd.f32 %v1955_v23, %v1921_v22 }
  0xe3   :  { %v612_v0 = vpop.f32.mrf.mxu1 }
  0xe4   :  { %v1922_v25 = vpop.f32.mrf.mxu0  ;;  %v613_v55 = vadd.f32 %v612_v0, %v318_v24 }
  0xe5   :  { %v1956_v26 = vpop.f32.mrf.mxu1 }
  0xe6   :  { %v321_v27 = vpop.f32.mrf.mxu0  ;;  %v624_v18 = vadd.f32 %v1956_v26, %v1922_v25 }
  0xe7   :  { %v615_v28 = vpop.f32.mrf.mxu1 }
  0xe8   :  { %v2553_v29 = vpop.f32.mrf.mxu0  ;;  %v898_v61 = vadd.f32 %v2485_v42, %v624_v18 }
  0xe9   :  { %2901 = vst [vmem:[#allocation18_spill] sm:$0xff] %v2553_v29  ;;  %v2555_v30 = vpop.f32.mrf.mxu1 }
  0xea   :  { %2902 = vst [vmem:[#allocation19_spill] sm:$0xff] %v2555_v30  ;;  %v2557_v31 = vpop.f32.mrf.mxu0  ;;  %v616_v30 = vadd.f32 %v615_v28, %v321_v27  ;;  %v930_v42 = vmax.f32 %v898_v61, 0.0 }
  0xeb   :  { %2903 = vst [vmem:[#allocation20_spill] sm:$0xff] %v2557_v31  ;;  %v2559_v32 = vpop.f32.mrf.mxu1 }
  0xec   :  { %2904 = vst [vmem:[#allocation21_spill] sm:$0xff] %v2559_v32  ;;  %v2561_v34 = vpop.f32.mrf.mxu0 }
  0xed   :  { %2905 = vst [vmem:[#allocation22_spill] sm:$0xff] %v2561_v34  ;;  %v2563_v35 = vpop.f32.mrf.mxu1 }
  0xee   :  { %2906 = vst [vmem:[#allocation23_spill] sm:$0xff] %v2563_v35  ;;  %v2565_v36 = vpop.f32.mrf.mxu0 }
  0xef   :  { %2907 = vst [vmem:[#allocation24_spill] sm:$0xff] %v2565_v36  ;;  %v2567_v37 = vpop.f32.mrf.mxu1 }
  0xf0   :  { %2908 = vst [vmem:[#allocation25_spill] sm:$0xff] %v2567_v37  ;;  %v2569_v58 = vpop.f32.mrf.mxu0 }
  0xf1   :  { %v2571_v60 = vpop.f32.mrf.mxu1 }
  0xf2   :  { %v2573_v3 = vpop.f32.mrf.mxu0 }
  0xf3   :  { %2909 = vst [vmem:[#allocation26_spill] sm:$0xff] %v2573_v3  ;;  %v2575_v4 = vpop.f32.mrf.mxu1  ;;  %v897_v3 = vadd.f32 %v2481_v40, %v621_v1  ;;  %v605_v1 = vadd.f32 %v2539_v11, %v2537_v10 }
  0xf4   :  { %2910 = vst [vmem:[#allocation27_spill] sm:$0xff] %v2575_v4  ;;  %v1930_v6 = vpop.f32.mrf.mxu0 }
  0xf5   :  { %v1964_v7 = vpop.f32.mrf.mxu1  ;;  %v929_v24 = vmax.f32 %v897_v3, 0.0  ;;  %v2916_v3 = vld [vmem:[#allocation23_spill] sm:$0xff] }
  0xf6   :  { %v2577_v9 = vpop.f32.mrf.mxu0 }
  0xf7   :  { %v2579_v12 = vpop.f32.mrf.mxu1 }
  0xf8   :  { %v1933_v13 = vpop.f32.mrf.mxu0 }
  0xf9   :  { %v1967_v14 = vpop.f32.mrf.mxu1 }
  0xfa   :  { %v366_v17 = vpop.f32.mrf.mxu0  ;;  %v669_v25 = vadd.f32 %v1967_v14, %v1933_v13  ;;  %v2918_v14 = vld [vmem:[#allocation18_spill] sm:$0xff] }
  0xfb   :  { %v660_v57 = vpop.f32.mrf.mxu1 }
  0xfc   :  { %v1934_v38 = vpop.f32.mrf.mxu0 }
  0xfd   :  { %v1968_v33 = vpop.f32.mrf.mxu1 }
  0xfe   :  { %v369_v63 = vpop.f32.mrf.mxu0  ;;  %v672_v29 = vadd.f32 %v1968_v33, %v1934_v38  ;;  %v896_v33 = vadd.f32 %v2491_v45, %v616_v30  ;;  %v2911_v30 = vld [vmem:[#allocation6_spill] sm:$0xff] }
  0xff   :  { %v663_v5 = vpop.f32.mrf.mxu1 }
 0x100   :  { %v1937_v8 = vpop.f32.mrf.mxu0  ;;  %v910_v38 = vadd.f32 %v2495_v47, %v672_v29  ;;  %v664_v18 = vadd.f32 %v663_v5, %v369_v63  ;;  %v600_v47 = vadd.f32 %v2551_v21, %v2549_v59  ;;  %v986_v5 = vpack.c.bf16 %v930_v42, %v929_v24  ;;  %v2922_v42 = vld [vmem:[#allocation24_spill] sm:$0xff]  ;;  %v2926_v24 = vld [vmem:[#allocation21_spill] sm:$0xff] }
 0x101   :  { %v1971_v32 = vpop.f32.mrf.mxu1 }
 0x102   :  { %v685_v31 = vadd.f32 %v1971_v32, %v1937_v8  ;;  %v382_v37 = vpop.f32.mrf.mxu0  ;;  %v608_v32 = vadd.f32 %v1952_v20, %v1918_v19  ;;  %v928_v20 = vmax.f32 %v896_v33, 0.0  ;;  %v942_v63 = vmax.f32 %v910_v38, 0.0  ;;  %v2923_v33 = vld [vmem:[#allocation25_spill] sm:$0xff] }
 0x103   :  { %v676_v36 = vpop.f32.mrf.mxu1  ;;  %v908_v10 = vadd.f32 %v2505_v52, %v664_v18  ;;  %v892_v0 = vadd.f32 %v2509_v54, %v600_v47  ;;  %v632_v38 = vadd.f32 %v2923_v33, %v2922_v42 }
 0x104   :  { %v677_v2 = vadd.f32 %v676_v36, %v382_v37  ;;  %v1938_v62 = vpop.f32.mrf.mxu0  ;;  %v913_v34 = vadd.f32 %v2479_v39, %v685_v31  ;;  %v894_v45 = vadd.f32 %v2501_v50, %v608_v32  ;;  %v653_v50 = vadd.f32 %v2571_v60, %v2569_v58  ;;  %v2914_v36 = vld [vmem:[#allocation27_spill] sm:$0xff]  ;;  %v2915_v60 = vld [vmem:[#allocation22_spill] sm:$0xff] }
 0x105   :  { %v1972_v35 = vpop.f32.mrf.mxu1 }
 0x106   :  { %v688_v4 = vadd.f32 %v1972_v35, %v1938_v62  ;;  %v385_v26 = vpop.f32.mrf.mxu0  ;;  %v911_v8 = vadd.f32 %v2487_v43, %v677_v2  ;;  %v945_v39 = vmax.f32 %v913_v34, 0.0  ;;  %v895_v43 = vadd.f32 %v2493_v46, %v613_v55  ;;  %v2912_v34 = vld [vmem:[#allocation7_spill] sm:$0xff]  ;;  %v2913_v35 = vld [vmem:[#allocation26_spill] sm:$0xff] }
 0x107   :  { %v679_v53 = vpop.f32.mrf.mxu1  ;;  %v597_v55 = vadd.f32 %v2543_v16, %v2541_v15  ;;  %v926_v52 = vmax.f32 %v894_v45, 0.0  ;;  %v648_v15 = vadd.f32 %v2579_v12, %v2577_v9  ;;  %v940_v16 = vmax.f32 %v908_v10, 0.0  ;;  %v2928_v45 = vld [vmem:[#allocation16_spill] sm:$0xff]  ;;  %v2930_v10 = vld [vmem:[#allocation17_spill] sm:$0xff] }
 0x108   :  { %v914_v22 = vadd.f32 %v2483_v41, %v688_v4  ;;  %v680_v23 = vadd.f32 %v679_v53, %v385_v26  ;;  %v909_v41 = vadd.f32 %v2497_v48, %v669_v25  ;;  %v661_v53 = vadd.f32 %v660_v57, %v366_v17  ;;  %v2919_v17 = vld [vmem:[#allocation19_spill] sm:$0xff]  ;;  %v2920_v26 = vld [vmem:[#allocation8_spill] sm:$0xff] }
 0x109   :  { %v943_v2 = vmax.f32 %v911_v8, 0.0  ;;  %v893_v48 = vadd.f32 %v2499_v49, %v605_v1  ;;  %v927_v11 = vmax.f32 %v895_v43, 0.0  ;;  %v891_v31 = vadd.f32 %v2911_v30, %v597_v55  ;;  %v2925_v1 = vld [vmem:[#allocation20_spill] sm:$0xff]  ;;  %v2931_v55 = vld [vmem:[#allocation14_spill] sm:$0xff] }
 0x10a   :  { %v946_v62 = vmax.f32 %v914_v22, 0.0  ;;  %v912_v40 = vadd.f32 %v2489_v44, %v680_v23  ;;  %v656_v44 = vadd.f32 %v1964_v7, %v1930_v6  ;;  %v941_v59 = vmax.f32 %v909_v41, 0.0  ;;  %v2917_v7 = vld [vmem:[#allocation9_spill] sm:$0xff]  ;;  %v2921_v23 = vld [vmem:[#allocation11_spill] sm:$0xff] }
 0x10b   :  { %v907_v21 = vadd.f32 %v2503_v51, %v661_v53  ;;  %v985_v27 = vpack.c.bf16 %v928_v20, %v927_v11  ;;  %v925_v29 = vmax.f32 %v893_v48, 0.0  ;;  %v905_v51 = vadd.f32 %v2912_v34, %v653_v50  ;;  %v2028_v11 = vld [vmem:[%s2878_s5] ss:$8 sps:$4 sm:$0xff]   ;;  %v2031_v50 = vld [vmem:[%s2878_s5 + $0x90] ss:$8 sps:$4 sm:$0xff]  }
 0x10c   :  { %v944_v61 = vmax.f32 %v912_v40, 0.0  ;;  %v994_v19 = vpack.c.bf16 %v946_v62, %v945_v39  ;;  %v906_v49 = vadd.f32 %v2513_v56, %v656_v44  ;;  %v992_v28 = vpack.c.bf16 %v942_v63, %v941_v59  ;;  %v2924_v62 = vld [vmem:[#allocation10_spill] sm:$0xff]  ;;  %v2932_v59 = vld [vmem:[#allocation15_spill] sm:$0xff] }
 0x10d   :  { %v645_v37 = vadd.f32 %v2914_v36, %v2913_v35  ;;  %v939_v58 = vmax.f32 %v907_v21, 0.0  ;;  %v984_v54 = vpack.c.bf16 %v926_v52, %v925_v29  ;;  %v924_v56 = vmax.f32 %v892_v0, 0.0  ;;  %v2034_v21 = vld [vmem:[%s2878_s5 + $0x14] ss:$8 sps:$4 sm:$0xff]   ;;  %v2036_v52 = vld [vmem:[%s2878_s5 + $0xa4] ss:$8 sps:$4 sm:$0xff]  }
 0x10e   :  { %1771 = vmatprep.subr.bf16.mxu0 %v994_v19  ;;  %1973 = vmatprep.subr.bf16.mxu1 %v994_v19  ;;  %v993_v46 = vpack.c.bf16 %v944_v61, %v943_v2  ;;  %v640_v4 = vadd.f32 %v2916_v3, %v2915_v60  ;;  %v938_v6 = vmax.f32 %v906_v49, 0.0  ;;  %v904_v9 = vadd.f32 %v2917_v7, %v648_v15  ;;  %v2927_v2 = vld [vmem:[#allocation13_spill] sm:$0xff]  ;;  %v2040_v49 = vld [vmem:[%s2878_s5 + $0x24] ss:$8 sps:$4 sm:$0xff]  }
 0x10f   :  { %1772 = vmatpush3.bf16.msra.mxu0 %v986_v5  ;;  %1981 = vmatpush3.bf16.msra.mxu1 %v986_v5  ;;  %v991_v12 = vpack.c.bf16 %v940_v16, %v939_v58  ;;  %v923_v13 = vmax.f32 %v891_v31, 0.0  ;;  %v637_v57 = vadd.f32 %v2919_v17, %v2918_v14  ;;  %v937_v25 = vmax.f32 %v905_v51, 0.0  ;;  %v2929_v5 = vld [vmem:[#allocation12_spill] sm:$0xff]  ;;  %v2044_v16 = vld [vmem:[%s2878_s5 + $0x20] ss:$8 sps:$4 sm:$0xff]   ;;  %v2723_v17 = vpop.permute.xlu0 %1179 }
 0x110   :  { %1773 = vmatprep.subr.bf16.mxu0 %v993_v46  ;;  %1974 = vmatprep.subr.bf16.mxu1 %v993_v46  ;;  %v903_v8 = vadd.f32 %v2920_v26, %v645_v37  ;;  %v902_v32 = vadd.f32 %v2921_v23, %v640_v4  ;;  %v936_v18 = vmax.f32 %v904_v9, 0.0  ;;  %v629_v43 = vadd.f32 %v2926_v24, %v2925_v1  ;;  %v2038_v0 = vld [vmem:[%s2878_s5 + $0x10] ss:$8 sps:$4 sm:$0xff]   ;;  %v2042_v15 = vld [vmem:[%s2878_s5 + $0xb4] ss:$8 sps:$4 sm:$0xff]  }
 0x111   :  { %v983_v22 = vpack.c.bf16 %v924_v56, %v923_v13  ;;  %v990_v39 = vpack.c.bf16 %v938_v6, %v937_v25  ;;  %v901_v40 = vadd.f32 %v2924_v62, %v637_v57  ;;  %v900_v61 = vadd.f32 %v2927_v2, %v632_v38  ;;  %v2046_v29 = vld [vmem:[%s2878_s5 + $0x34] ss:$8 sps:$4 sm:$0xff]   ;;  %v2048_v30 = vld [vmem:[%s2878_s5 + $0xc4] ss:$8 sps:$4 sm:$0xff]   ;;  %v2050_v31 = vld [vmem:[%s2878_s5 + $0x30] ss:$8 sps:$4 sm:$0xff]   ;;  %v2725_v57 = vpop.permute.xlu1 %1184 }
 0x112   :  { %v935_v41 = vmax.f32 %v903_v8, 0.0  ;;  %v934_v53 = vmax.f32 %v902_v32, 0.0  ;;  %v899_v20 = vadd.f32 %v2929_v5, %v629_v43  ;;  %v2051_v34 = vld [vmem:[%s2878_s5 + $0xc0] ss:$8 sps:$4 sm:$0xff]   ;;  %v2052_v51 = vld [vmem:[%s2878_s5 + $0x44] ss:$8 sps:$4 sm:$0xff]   ;;  %v1571_v2 = vlaneseq }
 0x113   :  { %1774 = vmatpush3.bf16.msra.mxu0 %v985_v27  ;;  %1982 = vmatpush3.bf16.msra.mxu1 %v985_v27  ;;  %v933_v47 = vmax.f32 %v901_v40, 0.0  ;;  %v932_v44 = vmax.f32 %v900_v61, 0.0  ;;  %v2039_v27 = vld [vmem:[%s2878_s5 + $0xa0] ss:$8 sps:$4 sm:$0xff]   ;;  %v2054_v35 = vld [vmem:[%s2878_s5 + $0xd4] ss:$8 sps:$4 sm:$0xff]   ;;  %v2727_v25 = vpop.permute.xlu0 %1099 }
 0x114   :  { %1775 = vmatprep.subr.bf16.mxu0 %v992_v28  ;;  %1975 = vmatprep.subr.bf16.mxu1 %v992_v28  ;;  %v989_v19 = vpack.c.bf16 %v936_v18, %v935_v41  ;;  %v931_v46 = vmax.f32 %v899_v20, 0.0  ;;  %v2045_v28 = vld [vmem:[%s2878_s5 + $0xb0] ss:$8 sps:$4 sm:$0xff]   ;;  %v2056_v36 = vld [vmem:[%s2878_s5 + $0x40] ss:$8 sps:$4 sm:$0xff]  }
 0x115   :  { %v988_v63 = vpack.c.bf16 %v934_v53, %v933_v47  ;;  %v2057_v37 = vld [vmem:[%s2878_s5 + $0xd0] ss:$8 sps:$4 sm:$0xff]   ;;  %v2058_v58 = vld [vmem:[%s2878_s5 + $0x54] ss:$8 sps:$4 sm:$0xff]   ;;  %v2063_v60 = vld [vmem:[%s2878_s5 + $0xe0] ss:$8 sps:$4 sm:$0xff]   ;;  %v2729_v26 = vpop.permute.xlu1 %1104 }
 0x116   :  { %v987_v48 = vpack.c.bf16 %v932_v44, %v931_v46  ;;  %v2062_v56 = vld [vmem:[%s2878_s5 + $0x50] ss:$8 sps:$4 sm:$0xff]   ;;  %v2064_v3 = vld [vmem:[%s2878_s5 + $0x64] ss:$8 sps:$4 sm:$0xff]   ;;  %v2066_v4 = vld [vmem:[%s2878_s5 + $0xf4] ss:$8 sps:$4 sm:$0xff]  }
 0x117   :  { %1776 = vmatpush3.bf16.msra.mxu0 %v984_v54  ;;  %1983 = vmatpush3.bf16.msra.mxu1 %v984_v54  ;;  %v2060_v54 = vld [vmem:[%s2878_s5 + $0xe4] ss:$8 sps:$4 sm:$0xff]   ;;  %v2068_v6 = vld [vmem:[%s2878_s5 + $0x60] ss:$8 sps:$4 sm:$0xff]   ;;  %v2069_v7 = vld [vmem:[%s2878_s5 + $0xf0] ss:$8 sps:$4 sm:$0xff]   ;;  %v2731_v8 = vpop.permute.xlu0 %1169 }
 0x118   :  { %1777 = vmatprep.subr.bf16.mxu0 %v991_v12  ;;  %1976 = vmatprep.subr.bf16.mxu1 %v991_v12  ;;  %v2070_v9 = vld [vmem:[%s2878_s5 + $0x74] ss:$8 sps:$4 sm:$0xff]   ;;  %v2072_v12 = vld [vmem:[%s2878_s5 + $0x70] ss:$8 sps:$4 sm:$0xff]   ;;  %v2073_v13 = vld [vmem:[%s2878_s5 + $0x84] ss:$8 sps:$4 sm:$0xff]  }
 0x119   :  { %v2075_v14 = vld [vmem:[%s2878_s5 + $0x80] ss:$8 sps:$4 sm:$0xff]   ;;  %v2099_v41 = vmov 1966171168  }
 0x11a   :  { %v1569_v53 = vunpack.c.l.s4 %v2099_v41 }
 0x11b   :  { %1778 = vmatpush3.bf16.msra.mxu0 %v983_v22  ;;  %1984 = vmatpush3.bf16.msra.mxu1 %v983_v22  ;;  %v2733_v22 = vpop.permute.xlu1 %1174  ;;  %v2735_v23 = vpop.permute.xlu0 %1089 }
 0x11c   :  { %1779 = vmatprep.subr.bf16.mxu0 %v990_v39  ;;  %1977 = vmatprep.subr.bf16.mxu1 %v990_v39  ;;  %v1570_v61 = vunpack.c.0.s8 %v1569_v53 }
 0x11f   :  { %1780 = vmatpush3.bf16.msra.mxu0 %v2928_v45  ;;  %1985 = vmatpush3.bf16.msra.mxu1 %v2928_v45  ;;  %v2737_v32 = vpop.permute.xlu1 %1094  ;;  %v2739_v42 = vpop.permute.xlu0 %1159  ;;  %v2762_v45 = vld.sshfl [vmem:[%s2880_s7] sm:$0x11 pattern:$0x75316420] }
 0x120   :  { %1781 = vmatprep.subr.bf16.mxu0 %v989_v19  ;;  %1978 = vmatprep.subr.bf16.mxu1 %v989_v19  ;;  %v1572_v19 = vshrl.u32 %v1571_v2, 7  ;;  %2937 = vst [vmem:[#allocation22_spill] sm:$0xff] %v2762_v45  ;;  %v1567_v5 = vcombine.high %v2762_v45, %v2762_v45 }
 0x122   :  { %v2768_v20 = vsub.s32 %v1570_v61, %v1572_v19 }
 0x123   :  { %1782 = vmatpush3.bf16.msra.mxu0 %v2930_v10  ;;  %1986 = vmatpush3.bf16.msra.mxu1 %v2930_v10  ;;  %v2741_v33 = vpop.permute.xlu1 %1164  ;;  %v2743_v38 = vpop.permute.xlu0 %1079 }
 0x124   :  { %1783 = vmatprep.subr.bf16.mxu0 %v988_v63  ;;  %1979 = vmatprep.subr.bf16.mxu1 %v988_v63  ;;  %2939 = vst [vmem:[#allocation9_spill] sm:$0xff] %v2768_v20  ;;  %v1581_v10 = vrot.slane %v1567_v5, %v2768_v20 }
 0x127   :  { %1784 = vmatpush3.bf16.msra.mxu0 %v2931_v55  ;;  %1987 = vmatpush3.bf16.msra.mxu1 %v2931_v55  ;;  %v2745_v18 = vpop.permute.xlu1 %1084  ;;  %v2747_v39 = vpop.permute.xlu0 %1149 }
 0x128   :  { %1785 = vmatprep.subr.bf16.mxu0 %v987_v48  ;;  %1980 = vmatprep.subr.bf16.mxu1 %v987_v48 }
 0x12b   :  { %1786 = vmatpush3.bf16.msra.mxu0 %v2932_v59  ;;  %1988 = vmatpush3.bf16.msra.mxu1 %v2932_v59  ;;  %v2749_v62 = vpop.permute.xlu1 %1154  ;;  %v2751_v40 = vpop.permute.xlu0 %1069 }
 0x12c   :  { %2933 = vst [vmem:[#allocation6_spill] sm:$0xff] %v2751_v40 }
 0x12e   :  { %1380 = vmatmul.mubr.bf16.vlgmr.msra.gmra.mxu0 %v2028_v11  ;;  %1452 = vmatmul.mubr.bf16.vlgmr.msra.gmra.mxu1 %v2031_v50 }
 0x12f   :  { %1387 = vmatprep.mubr.bf16.mxu0 %v2034_v21  ;;  %1459 = vmatprep.mubr.bf16.mxu1 %v2036_v52  ;;  %v2753_v1 = vpop.permute.xlu1 %1074  ;;  %v2755_v24 = vpop.permute.xlu0 %1139 }
 0x130   :  { %2934 = vst [vmem:[#allocation7_spill] sm:$0xff] %v2753_v1  ;;  %2935 = vst [vmem:[#allocation26_spill] sm:$0xff] %v2755_v24 }
 0x133   :  { %v2757_v43 = vpop.permute.xlu1 %1144  ;;  %v2764_v47 = vpop.permute.xlu0 %1059 }
 0x134   :  { %2936 = vst [vmem:[#allocation27_spill] sm:$0xff] %v2757_v43  ;;  %2938 = vst [vmem:[#allocation23_spill] sm:$0xff] %v2764_v47 }
 0x136   :  { %1388 = vmatmul.mubr.bf16.gmra.mxu0 %v2038_v0  ;;  %1460 = vmatmul.mubr.bf16.gmra.mxu1 %v2039_v27 }
 0x137   :  { %1395 = vmatprep.mubr.bf16.mxu0 %v2040_v49  ;;  %1467 = vmatprep.mubr.bf16.mxu1 %v2042_v15  ;;  %v2770_v44 = vpop.permute.xlu1 %1064  ;;  %v1130_v46 = vpop.permute.xlu0 %1129 }
 0x138   :  { %2940 = vst [vmem:[#allocation18_spill] sm:$0xff] %v2770_v44 }
 0x13b   :  { %v1135_v48 = vpop.permute.xlu1 %1134  ;;  %v2775_v55 = vpop.permute.xlu0 %1049 }
 0x13c   :  { %2941 = vst [vmem:[#allocation19_spill] sm:$0xff] %v2775_v55 }
 0x13e   :  { %1396 = vmatmul.mubr.bf16.gmra.mxu0 %v2044_v16  ;;  %1468 = vmatmul.mubr.bf16.gmra.mxu1 %v2045_v28 }
 0x13f   :  { %1403 = vmatprep.mubr.bf16.mxu0 %v2046_v29  ;;  %1475 = vmatprep.mubr.bf16.mxu1 %v2048_v30  ;;  %v2777_v11 = vpop.permute.xlu1 %1054  ;;  %v1120_v50 = vpop.permute.xlu0 %1119 }
 0x140   :  { %2942 = vst [vmem:[#allocation8_spill] sm:$0xff] %v2777_v11 }
 0x143   :  { %v1125_v59 = vpop.permute.xlu1 %1124  ;;  %v1040_v21 = vpop.permute.xlu0 %1039 }
 0x146   :  { %1404 = vmatmul.mubr.bf16.gmra.mxu0 %v2050_v31  ;;  %1476 = vmatmul.mubr.bf16.gmra.mxu1 %v2051_v34 }
 0x147   :  { %1411 = vmatprep.mubr.bf16.mxu0 %v2052_v51  ;;  %1483 = vmatprep.mubr.bf16.mxu1 %v2054_v35  ;;  %v1045_v52 = vpop.permute.xlu1 %1044  ;;  %v2779_v0 = vpop.permute.xlu0 %1109 }
 0x148   :  { %2943 = vst [vmem:[#allocation11_spill] sm:$0xff] %v2779_v0 }
 0x14b   :  { %v2781_v15 = vpop.permute.xlu1 %1114  ;;  %v1030_v51 = vpop.permute.xlu0 %1029 }
 0x14c   :  { %2944 = vst [vmem:[#allocation24_spill] sm:$0xff] %v2781_v15 }
 0x14e   :  { %1412 = vmatmul.mubr.bf16.gmra.mxu0 %v2056_v36  ;;  %1484 = vmatmul.mubr.bf16.gmra.mxu1 %v2057_v37 }
 0x14f   :  { %1419 = vmatprep.mubr.bf16.mxu0 %v2058_v58  ;;  %1491 = vmatprep.mubr.bf16.mxu1 %v2060_v54  ;;  %v1035_v54 = vpop.permute.xlu1 %1034 }
 0x156   :  { %1420 = vmatmul.mubr.bf16.gmra.mxu0 %v2062_v56  ;;  %1492 = vmatmul.mubr.bf16.gmra.mxu1 %v2063_v60 }
 0x157   :  { %1427 = vmatprep.mubr.bf16.mxu0 %v2064_v3  ;;  %1499 = vmatprep.mubr.bf16.mxu1 %v2066_v4 }
 0x15e   :  { %1428 = vmatmul.mubr.bf16.gmra.mxu0 %v2068_v6  ;;  %1500 = vmatmul.mubr.bf16.gmra.mxu1 %v2069_v7 }
 0x15f   :  { %1435 = vmatprep.mubr.bf16.mxu0 %v2070_v9  ;;  %1616 = vmatprep.mubr.bf16.mxu1 %v1581_v10 }
 0x166   :  { %1436 = vmatmul.mubr.bf16.gmra.mxu0 %v2072_v12 }
 0x167   :  { %1443 = vmatprep.mubr.bf16.mxu0 %v2073_v13 }
 0x16e   :  { %1444 = vmatmul.mubr.bf16.gmra.mxu0 %v2075_v14 }
 0x1ee   :  { %v1787_v27 = vpop.f32.mrf.mxu0  ;;  %v1841_v49 = vpop.f32.mrf.mxu1 }
 0x1f0   :  { %v1788_v16 = vpop.f32.mrf.mxu0  ;;  %v1842_v28 = vpop.f32.mrf.mxu1 }
 0x1f1   :  { %v1789_v29 = vadd.f32 %v1788_v16, %v1787_v27  ;;  %v1843_v30 = vadd.f32 %v1842_v28, %v1841_v49 }
 0x1f2   :  { %v1790_v31 = vpop.f32.mrf.mxu0  ;;  %v1844_v34 = vpop.f32.mrf.mxu1 }
 0x1f3   :  { %v1382_v35 = vadd.f32 %v1789_v29, %v1030_v51  ;;  %v1454_v36 = vadd.f32 %v1843_v30, %v1120_v50 }
 0x1f4   :  { %v1791_v37 = vpop.f32.mrf.mxu0  ;;  %v1845_v58 = vpop.f32.mrf.mxu1 }
 0x1f5   :  { %v1792_v56 = vadd.f32 %v1791_v37, %v1790_v31  ;;  %v1846_v60 = vadd.f32 %v1845_v58, %v1844_v34  ;;  %v1508_v9 = vmax.f32 %v1382_v35, 0.0  ;;  %v1526_v12 = vmax.f32 %v1454_v36, 0.0 }
 0x1f6   :  { %v1793_v3 = vpop.f32.mrf.mxu0  ;;  %v1847_v4 = vpop.f32.mrf.mxu1 }
 0x1f7   :  { %v1385_v6 = vadd.f32 %v1792_v56, %v1035_v54  ;;  %v1457_v7 = vadd.f32 %v1846_v60, %v1125_v59 }
 0x1f8   :  { %v1794_v13 = vpop.f32.mrf.mxu0  ;;  %v1848_v14 = vpop.f32.mrf.mxu1 }
 0x1f9   :  { %v1509_v41 = vmax.f32 %v1385_v6, 0.0  ;;  %v1527_v53 = vmax.f32 %v1457_v7, 0.0  ;;  %v1795_v2 = vadd.f32 %v1794_v13, %v1793_v3  ;;  %v1849_v61 = vadd.f32 %v1848_v14, %v1847_v4 }
 0x1fa   :  { %v1796_v19 = vpop.f32.mrf.mxu0  ;;  %v1850_v5 = vpop.f32.mrf.mxu1 }
 0x1fb   :  { %v2783_v10 = vpack.c.bf16 %v1509_v41, %v1508_v9  ;;  %v2785_v50 = vpack.c.bf16 %v1527_v53, %v1526_v12  ;;  %v1390_v27 = vadd.f32 %v1795_v2, %v1040_v21  ;;  %v1462_v28 = vadd.f32 %v1849_v61, %v1130_v46 }
 0x1fc   :  { %v1797_v49 = vpop.f32.mrf.mxu0  ;;  %v1851_v16 = vpop.f32.mrf.mxu1 }
 0x1fd   :  { %2945 = vst [vmem:[#allocation25_spill] sm:$0xff] %v2783_v10  ;;  %2946 = vst [vmem:[#allocation10_spill] sm:$0xff] %v2785_v50  ;;  %v1798_v29 = vadd.f32 %v1797_v49, %v1796_v19  ;;  %v1852_v59 = vadd.f32 %v1851_v16, %v1850_v5  ;;  %v1510_v35 = vmax.f32 %v1390_v27, 0.0  ;;  %v1528_v58 = vmax.f32 %v1462_v28, 0.0 }
 0x1fe   :  { %v1799_v30 = vpop.f32.mrf.mxu0  ;;  %v2787_v31 = vpop.f32.mrf.mxu1 }
 0x1ff   :  { %v1393_v34 = vadd.f32 %v1798_v29, %v1045_v52  ;;  %v1465_v51 = vadd.f32 %v1852_v59, %v1135_v48 }
 0x200   :  { %v1800_v36 = vpop.f32.mrf.mxu0  ;;  %v2789_v37 = vpop.f32.mrf.mxu1 }
 0x201   :  { %v1511_v54 = vmax.f32 %v1393_v34, 0.0  ;;  %v1529_v56 = vmax.f32 %v1465_v51, 0.0  ;;  %v2791_v60 = vadd.f32 %v1800_v36, %v1799_v30 }
 0x202   :  { %v2793_v21 = vpop.f32.mrf.mxu0  ;;  %v2795_v3 = vpop.f32.mrf.mxu1 }
 0x203   :  { %2947 = vst [vmem:[#allocation20_spill] sm:$0xff] %v2791_v60  ;;  %2948 = vst [vmem:[#allocation21_spill] sm:$0xff] %v2793_v21  ;;  %v2797_v46 = vpack.c.bf16 %v1511_v54, %v1510_v35  ;;  %v2799_v4 = vpack.c.bf16 %v1529_v56, %v1528_v58 }
 0x204   :  { %v2801_v6 = vpop.f32.mrf.mxu0  ;;  %v2803_v48 = vpop.f32.mrf.mxu1 }
 0x205   :  { %2949 = vst [vmem:[#allocation13_spill] sm:$0xff] %v2797_v46  ;;  %2950 = vst [vmem:[#allocation16_spill] sm:$0xff] %v2799_v4 }
 0x206   :  { %2951 = vst [vmem:[#allocation12_spill] sm:$0xff] %v2801_v6  ;;  %v2805_v52 = vpop.f32.mrf.mxu0  ;;  %v2807_v7 = vpop.f32.mrf.mxu1 }
 0x207   :  { %2952 = vst [vmem:[#allocation17_spill] sm:$0xff] %v2805_v52 }
 0x208   :  { %v2809_v9 = vpop.f32.mrf.mxu0  ;;  %v2811_v12 = vpop.f32.mrf.mxu1 }
 0x209   :  { %2953 = vst [vmem:[#allocation14_spill] sm:$0xff] %v2809_v9 }
 0x20a   :  { %v2813_v13 = vpop.f32.mrf.mxu0  ;;  %v1862_v14 = vpop.f32.mrf.mxu1 }
 0x20c   :  { %v2815_v41 = vpop.f32.mrf.mxu0  ;;  %v1863_v53 = vpop.f32.mrf.mxu1 }
 0x20e   :  { %v2817_v2 = vpop.f32.mrf.mxu0  ;;  %v1865_v61 = vpop.f32.mrf.mxu1 }
 0x210   :  { %v2819_v19 = vpop.f32.mrf.mxu0  ;;  %v1866_v5 = vpop.f32.mrf.mxu1 }
 0x212   :  { %v1814_v27 = vpop.f32.mrf.mxu0  ;;  %v1868_v49 = vpop.f32.mrf.mxu1 }
 0x214   :  { %v1815_v16 = vpop.f32.mrf.mxu0  ;;  %v1869_v28 = vpop.f32.mrf.mxu1 }
 0x216   :  { %v1817_v29 = vpop.f32.mrf.mxu0  ;;  %v1871_v59 = vpop.f32.mrf.mxu1 }
 0x218   :  { %v1818_v30 = vpop.f32.mrf.mxu0  ;;  %v1872_v34 = vpop.f32.mrf.mxu1 }
 0x219   :  { %v1873_v24 = vadd.f32 %v1872_v34, %v1871_v59 }
 0x21a   :  { %v1820_v51 = vpop.f32.mrf.mxu0  ;;  %v1874_v35 = vpop.f32.mrf.mxu1 }
 0x21c   :  { %v1821_v36 = vpop.f32.mrf.mxu0  ;;  %v1875_v58 = vpop.f32.mrf.mxu1 }
 0x21d   :  { %v1876_v11 = vadd.f32 %v1875_v58, %v1874_v35 }
 0x21e   :  { %v1823_v54 = vpop.f32.mrf.mxu0  ;;  %v1877_v56 = vpop.f32.mrf.mxu1 }
 0x220   :  { %v1824_v63 = vpop.f32.mrf.mxu0  ;;  %v1878_v20 = vpop.f32.mrf.mxu1 }
 0x221   :  { %v1879_v45 = vadd.f32 %v1878_v20, %v1877_v56  ;;  %v1870_v20 = vadd.f32 %v1869_v28, %v1868_v49  ;;  %v1497_v56 = vadd.f32 %v1876_v11, %v2733_v22  ;;  %v1825_v1 = vadd.f32 %v1824_v63, %v1823_v54  ;;  %v2958_v49 = vld [vmem:[#allocation6_spill] sm:$0xff]  ;;  %v2963_v54 = vld [vmem:[#allocation23_spill] sm:$0xff] }
 0x222   :  { %v1826_v10 = vpop.f32.mrf.mxu0  ;;  %v1880_v46 = vpop.f32.mrf.mxu1 }
 0x223   :  { %v1502_v0 = vadd.f32 %v1879_v45, %v2723_v17  ;;  %v1430_v22 = vadd.f32 %v1825_v1, %v2735_v23 }
 0x224   :  { %v1827_v50 = vpop.f32.mrf.mxu0  ;;  %v1881_v4 = vpop.f32.mrf.mxu1 }
 0x225   :  { %v1882_v15 = vadd.f32 %v1881_v4, %v1880_v46  ;;  %v1538_v44 = vmax.f32 %v1502_v0, 0.0  ;;  %v1828_v9 = vadd.f32 %v1827_v50, %v1826_v10  ;;  %v1867_v46 = vadd.f32 %v1866_v5, %v1865_v61  ;;  %v2957_v5 = vld [vmem:[#allocation14_spill] sm:$0xff] }
 0x226   :  { %v1829_v60 = vpop.f32.mrf.mxu0  ;;  %v1864_v0 = vadd.f32 %v1863_v53, %v1862_v14  ;;  %v1537_v10 = vmax.f32 %v1497_v56, 0.0  ;;  %v1819_v50 = vadd.f32 %v1818_v30, %v1817_v29  ;;  %v1813_v4 = vadd.f32 %v2819_v19, %v2817_v2  ;;  %v2955_v53 = vld [vmem:[#allocation27_spill] sm:$0xff]  ;;  %v2956_v19 = vld [vmem:[#allocation17_spill] sm:$0xff]  ;;  %v2962_v30 = vld [vmem:[#allocation18_spill] sm:$0xff] }
 0x227   :  { %v1505_v55 = vadd.f32 %v1882_v15, %v2725_v57  ;;  %v1494_v57 = vadd.f32 %v1873_v24, %v2731_v8  ;;  %v1822_v15 = vadd.f32 %v1821_v36, %v1820_v51  ;;  %v1486_v8 = vadd.f32 %v1867_v46, %v2739_v42  ;;  %v2964_v46 = vld [vmem:[#allocation8_spill] sm:$0xff] }
 0x228   :  { %v1830_v47 = vpop.f32.mrf.mxu0 }
 0x229   :  { %v1539_v6 = vmax.f32 %v1505_v55, 0.0  ;;  %v1831_v21 = vadd.f32 %v1830_v47, %v1829_v60  ;;  %v1433_v55 = vadd.f32 %v1828_v9, %v2737_v32  ;;  %v1536_v24 = vmax.f32 %v1494_v57, 0.0 }
 0x22a   :  { %v1832_v40 = vpop.f32.mrf.mxu0  ;;  %v1425_v32 = vadd.f32 %v1822_v15, %v2745_v18  ;;  %v1855_v18 = vadd.f32 %v2789_v37, %v2787_v31  ;;  %v1534_v9 = vmax.f32 %v1486_v8, 0.0  ;;  %v1414_v31 = vadd.f32 %v1813_v4, %v2958_v49  ;;  %v2967_v8 = vld [vmem:[#allocation24_spill] sm:$0xff] }
 0x22b   :  { %v1556_v52 = vpack.c.bf16 %v1539_v6, %v1538_v44  ;;  %v1438_v17 = vadd.f32 %v1831_v21, %v2727_v25  ;;  %v1489_v44 = vadd.f32 %v1870_v20, %v2741_v33  ;;  %v1858_v33 = vadd.f32 %v2803_v48, %v2795_v3  ;;  %v2954_v3 = vld [vmem:[#allocation7_spill] sm:$0xff] }
 0x22c   :  { %v1833_v43 = vpop.f32.mrf.mxu0  ;;  %v1481_v21 = vadd.f32 %v1864_v0, %v2749_v62  ;;  %v1555_v1 = vpack.c.bf16 %v1537_v10, %v1536_v24  ;;  %v1422_v6 = vadd.f32 %v1819_v50, %v2743_v38  ;;  %v1810_v62 = vadd.f32 %v2815_v41, %v2813_v13  ;;  %v2960_v13 = vld [vmem:[#allocation21_spill] sm:$0xff]  ;;  %v2961_v41 = vld [vmem:[#allocation12_spill] sm:$0xff] }
 0x22d   :  { %v1834_v45 = vadd.f32 %v1833_v43, %v1832_v40  ;;  %1883 = vmatprep.subr.bf16.mxu1 %v1556_v52  ;;  %v1522_v63 = vmax.f32 %v1438_v17, 0.0  ;;  %v1861_v40 = vadd.f32 %v2811_v12, %v2807_v7  ;;  %v1816_v43 = vadd.f32 %v1815_v16, %v1814_v27  ;;  %v2959_v16 = vld [vmem:[#allocation26_spill] sm:$0xff]  ;;  %v2966_v10 = vld [vmem:[#allocation20_spill] sm:$0xff] }
 0x22e   :  { %v1835_v25 = vpop.f32.mrf.mxu0  ;;  %v1535_v23 = vmax.f32 %v1489_v44, 0.0  ;;  %v1520_v52 = vmax.f32 %v1430_v22, 0.0  ;;  %v1519_v12 = vmax.f32 %v1425_v32, 0.0  ;;  %v1473_v2 = vadd.f32 %v1858_v33, %v2955_v53  ;;  %v2965_v44 = vld [vmem:[#allocation19_spill] sm:$0xff] }
 0x22f   :  { %v1441_v47 = vadd.f32 %v1834_v45, %v2729_v26  ;;  %v1521_v26 = vmax.f32 %v1433_v55, 0.0  ;;  %v1478_v7 = vadd.f32 %v1861_v40, %v2747_v39  ;;  %v1417_v48 = vadd.f32 %v1816_v43, %v2954_v3  ;;  %v2968_v32 = vld [vmem:[#allocation11_spill] sm:$0xff] }
 0x230   :  { %v1836_v42 = vpop.f32.mrf.mxu0  ;;  %v1533_v38 = vmax.f32 %v1481_v21, 0.0  ;;  %v1554_v61 = vpack.c.bf16 %v1535_v23, %v1534_v9  ;;  %v1807_v27 = vadd.f32 %v2957_v5, %v2956_v19  ;;  %v1518_v37 = vmax.f32 %v1422_v6, 0.0  ;;  %v2971_v6 = vld [vmem:[#allocation13_spill] sm:$0xff] }
 0x231   :  { %v1523_v11 = vmax.f32 %v1441_v47, 0.0  ;;  %v1547_v14 = vpack.c.bf16 %v1521_v26, %v1520_v52  ;;  %v1470_v28 = vadd.f32 %v1855_v18, %v2959_v16  ;;  %v1532_v29 = vmax.f32 %v1478_v7, 0.0  ;;  %v2973_v52 = vld [vmem:[#allocation22_spill] sm:$0xff] }
 0x232   :  { %v1838_v39 = vpop.f32.mrf.mxu0  ;;  %v1804_v59 = vadd.f32 %v2961_v41, %v2960_v13  ;;  %v1409_v34 = vadd.f32 %v1810_v62, %v2962_v30  ;;  %v1517_v51 = vmax.f32 %v1417_v48, 0.0  ;;  %v1546_v35 = vpack.c.bf16 %v1519_v12, %v1518_v37 }
 0x233   :  { %v1548_v60 = vpack.c.bf16 %v1523_v11, %v1522_v63  ;;  %v1531_v36 = vmax.f32 %v1473_v2, 0.0  ;;  %v1553_v58 = vpack.c.bf16 %v1533_v38, %v1532_v29  ;;  %v1406_v20 = vadd.f32 %v1807_v27, %v2963_v54 }
 0x234   :  { %v1516_v56 = vmax.f32 %v1414_v31, 0.0  ;;  %v1839_v17 = vpop.f32.mrf.mxu0  ;;  %v1530_v45 = vmax.f32 %v1470_v28, 0.0  ;;  %v1401_v57 = vadd.f32 %v1804_v59, %v2964_v46  ;;  %v1515_v15 = vmax.f32 %v1409_v34, 0.0 }
 0x235   :  { %1884 = vmatpush3.bf16.msra.mxu1 %v1548_v60  ;;  %v1840_v47 = vadd.f32 %v1839_v17, %v1838_v39  ;;  %v1398_v50 = vadd.f32 %v2966_v10, %v2965_v44  ;;  %v1514_v22 = vmax.f32 %v1406_v20, 0.0  ;;  %v1837_v63 = vadd.f32 %v1836_v42, %v1835_v25  ;;  %v2969_v60 = vld [vmem:[#allocation16_spill] sm:$0xff]  ;;  %v2972_v25 = vld [vmem:[#allocation25_spill] sm:$0xff] }
 0x236   :  { %1885 = vmatprep.subr.bf16.mxu1 %v1555_v1  ;;  %v1545_v55 = vpack.c.bf16 %v1517_v51, %v1516_v56  ;;  %v1552_v0 = vpack.c.bf16 %v1531_v36, %v1530_v45  ;;  %v1513_v11 = vmax.f32 %v1401_v57, 0.0  ;;  %v2970_v1 = vld [vmem:[#allocation10_spill] sm:$0xff]  ;;  %v2974_v42 = vld [vmem:[#allocation9_spill] sm:$0xff]  ;;  %v1558_v9 = vstv %s2881_s8 }
 0x237   :  { %v1544_v40 = vpack.c.bf16 %v1515_v15, %v1514_v22  ;;  %v1449_v24 = vadd.f32 %v1840_v47, %v2967_v8  ;;  %v1512_v43 = vmax.f32 %v1398_v50, 0.0  ;;  %v1446_v26 = vadd.f32 %v1837_v63, %v2968_v32 }
 0x238   :  { %v2975_v18 = vrot.slane %v2973_v52, %v2974_v42 }
 0x239   :  { %1886 = vmatpush3.bf16.msra.mxu1 %v1547_v14  ;;  %v1543_v33 = vpack.c.bf16 %v1513_v11, %v1512_v43  ;;  %v1525_v21 = vmax.f32 %v1449_v24, 0.0  ;;  %v1524_v23 = vmax.f32 %v1446_v26, 0.0 }
 0x23a   :  { %1887 = vmatprep.subr.bf16.mxu1 %v1554_v61 }
 0x23b   :  { %v1549_v4 = vpack.c.bf16 %v1525_v21, %v1524_v23 }
 0x23d   :  { %1888 = vmatpush3.bf16.msra.mxu1 %v1546_v35 }
 0x23e   :  { %1889 = vmatprep.subr.bf16.mxu1 %v1553_v58 }
 0x241   :  { %1890 = vmatpush3.bf16.msra.mxu1 %v1545_v55 }
 0x242   :  { %1891 = vmatprep.subr.bf16.mxu1 %v1552_v0 }
 0x245   :  { %1892 = vmatpush3.bf16.msra.mxu1 %v1544_v40 }
 0x246   :  { %1893 = vmatprep.subr.bf16.mxu1 %v2969_v60 }
 0x249   :  { %1894 = vmatpush3.bf16.msra.mxu1 %v1543_v33 }
 0x24a   :  { %1895 = vmatprep.subr.bf16.mxu1 %v2970_v1 }
 0x24d   :  { %1896 = vmatpush3.bf16.msra.mxu1 %v2971_v6 }
 0x24e   :  { %1897 = vmatprep.subr.bf16.mxu1 %v1549_v4 }
 0x251   :  { %1898 = vmatpush3.bf16.msra.mxu1 %v2972_v25 }
 0x254   :  { %1617 = vmatmul.mubr.bf16.vlgmr.msra.gmra.mxu1 %v2975_v18 }
 0x314   :  { %v1899_v7 = vpop.f32.mrf.mxu1 }
 0x316   :  { %v1900_v62 = vpop.f32.mrf.mxu1 }
 0x317   :  { %v1901_v3 = vadd.f32 %v1900_v62, %v1899_v7 }
 0x318   :  { %v1902_v48 = vpop.f32.mrf.mxu1 }
 0x319   :  { %v1619_v12 = vadd.f32 %v1901_v3, %v1558_v9 }
 0x31a   :  { %v1903_v14 = vpop.f32.mrf.mxu1 }
 0x31b   :  { %1625 = vst.msk [vmem:[#allocation3] sm:$0x1] %vm1624_vm4, %v1619_v12 }
 0x31c   :  { %2087 = shalt.err (!%p2084_p4)
}
 0x31d   :  { %1635 = dma.vmem_to_hbm [thread:$0]  %s1633_s22, 16, %s2882_s9, [#allocation4]  }
 0x31e   :  { %2096 = dma.done.wait [#allocation4], 16  }
 0x31f   :  { %2097 = vsyncadd [#allocation4], 4294967280 }
 0x320   :  { %1639 = vsyncpa [#allocation4], 1 }

</bundles_post_ra>
